<compile_context>
chip_gen: v7x
topology: tpu7x:2x2x1
jax: 0.10.0
libtpu: 0.0.40
codegen_flags: <defaults>
</compile_context>

<pallas_src>
import jax
import jax.numpy as jnp
from jax.experimental import pallas as pl
from jax.experimental.pallas import tpu as pltpu

_SUBLANE = 8    # f32 sublane tile
_LANE = 128     # lane tile


# ---------------------------------------------------------------------------
# Per-generation configuration
# ---------------------------------------------------------------------------
def _chip_config():
    """num TensorCores, scoped-VMEM limit, resident-path threshold (bytes)."""
    kind = ""
    try:
        kind = jax.devices()[0].device_kind.lower()
    except Exception:
        pass
    if "v7" in kind or "7x" in kind:
        # v7x: 64 MiB physical VMEM per TC, 2 TCs/chip, 3.2 TB/s HBM.
        return {"num_tc": 2, "vmem_limit": 48 << 20, "resident_threshold": 16 << 20}
    if "v5" in kind or "v6" in kind:
        # v5e / v6e: 128 MiB physical VMEM, single TC.
        return {"num_tc": 1, "vmem_limit": 96 << 20, "resident_threshold": 32 << 20}
    # Unknown chip: conservative settings that fit every generation.
    return {"num_tc": 1, "vmem_limit": 32 << 20, "resident_threshold": 12 << 20}


# ---------------------------------------------------------------------------
# Kernels
# ---------------------------------------------------------------------------
def _fused_kernel(x_ref, w1_ref, b1_ref, w2_ref, b2_ref, o_ref):
    """Single-block path: all operands resident in VMEM, one shot.

    x, w1, w2 are bf16 (native MXU mode, f32 accumulation); biases are f32.
    """
    h = jnp.dot(x_ref[...], w1_ref[...], preferred_element_type=jnp.float32)
    h = h + b1_ref[...]                      # (1, H) broadcasts over rows, f32
    h = h * jax.nn.sigmoid(h)                # SiLU in f32 (EUP)
    out = jnp.dot(h.astype(jnp.bfloat16), w2_ref[...],
                  preferred_element_type=jnp.float32)
    o_ref[...] = (out + b2_ref[...]).astype(o_ref.dtype)


def _tiled_kernel(x_ref, w1_ref, b1_ref, w2_ref, b2_ref, o_ref, acc_ref):
    """Grid = (output-column tiles [parallel], hidden tiles [reduction])."""
    k = pl.program_id(1)

    @pl.when(k == 0)
    def _():
        acc_ref[...] = jnp.zeros_like(acc_ref)

    # layer-1 partial: hidden columns belonging to reduction tile k (bf16 MXU).
    h = jnp.dot(x_ref[...], w1_ref[...], preferred_element_type=jnp.float32)
    h = h + b1_ref[...]
    h = h * jax.nn.sigmoid(h)                # SiLU in f32

    # layer-2 partial sum over hidden tile k for this output-column tile.
    acc_ref[...] += jnp.dot(h.astype(jnp.bfloat16), w2_ref[...],
                            preferred_element_type=jnp.float32)

    @pl.when(k == pl.num_programs(1) - 1)
    def _():
        o_ref[...] = (acc_ref[...] + b2_ref[...]).astype(o_ref.dtype)


# ---------------------------------------------------------------------------
# Wrappers
# ---------------------------------------------------------------------------
def _nbytes(a):
    return a.size * a.dtype.itemsize


def _resident_call(x, w1, b1, w2, b2, cfg):
    Bp, n_embd = x.shape
    H = w1.shape[1]
    flops = 2 * Bp * n_embd * H + 2 * Bp * H * H + 4 * Bp * H
    bytes_accessed = (_nbytes(x) + _nbytes(w1) + _nbytes(b1)
                      + _nbytes(w2) + _nbytes(b2) + Bp * H * 4)
    vmem_spec = pl.BlockSpec(memory_space=pltpu.MemorySpace.VMEM)
    return pl.pallas_call(
        _fused_kernel,
        out_shape=jax.ShapeDtypeStruct((Bp, H), jnp.float32),
        in_specs=[vmem_spec] * 5,
        out_specs=pl.BlockSpec(memory_space=pltpu.MemorySpace.VMEM),
        cost_estimate=pl.CostEstimate(flops=flops,
                                      transcendentals=Bp * H,
                                      bytes_accessed=bytes_accessed),
        compiler_params=pltpu.CompilerParams(
            vmem_limit_bytes=cfg["vmem_limit"]),
    )(x, w1, b1, w2, b2)


def _tiled_call(x, w1, b1, w2, b2, tile_n, tile_k, cfg):
    Bp, n_embd = x.shape
    H = w1.shape[1]
    num_n = H // tile_n
    num_k = H // tile_k

    # With the per-generation defaults num_n == num_TensorCores, so w1 is
    # streamed exactly once per core and layer-1 is never redundantly
    # recomputed on a core.  (Only a user-forced tile_n can create num_n >
    # num_TC; correctness is unaffected, just extra w1 traffic.)
    flops = num_n * 2 * Bp * n_embd * H + 2 * Bp * H * H + 4 * Bp * H * num_n
    bytes_accessed = (_nbytes(x) + num_n * _nbytes(w1) + _nbytes(b1)
                      + _nbytes(w2) + _nbytes(b2) + Bp * H * 4)

    grid_spec = pltpu.PrefetchScalarGridSpec(
        num_scalar_prefetch=0,
        grid=(num_n, num_k),                                     # reduction last
        in_specs=[
            pl.BlockSpec((Bp, n_embd), lambda i, k: (0, 0)),     # x (resident)
            pl.BlockSpec((n_embd, tile_k), lambda i, k: (0, k)), # w1 col tile
            pl.BlockSpec((1, tile_k), lambda i, k: (0, k)),      # b1 tile
            pl.BlockSpec((tile_k, tile_n), lambda i, k: (k, i)), # w2 tile
            pl.BlockSpec((1, tile_n), lambda i, k: (0, i)),      # b2 tile
        ],
        out_specs=pl.BlockSpec((Bp, tile_n), lambda i, k: (0, i)),
        scratch_shapes=[pltpu.VMEM((Bp, tile_n), jnp.float32)],
    )
    return pl.pallas_call(
        _tiled_kernel,
        out_shape=jax.ShapeDtypeStruct((Bp, H), jnp.float32),
        grid_spec=grid_spec,
        cost_estimate=pl.CostEstimate(flops=flops,
                                      transcendentals=num_n * Bp * H,
                                      bytes_accessed=bytes_accessed),
        compiler_params=pltpu.CompilerParams(
            # The output-column axis only shards across TensorCores on v7x
            # (where num_n defaults to 2); on single-TC chips num_n defaults
            # to 1 and this is a no-op.  Hidden axis is a reduction.
            dimension_semantics=("parallel", "arbitrary"),
            vmem_limit_bytes=cfg["vmem_limit"]),
    )(x, w1, b1, w2, b2)


def _auto_tile_k(H, n_embd, Bp, tile_n, vmem_limit):
    """Largest tile_k whose double-buffered bf16 tiles fit the VMEM budget."""
    budget = int(vmem_limit * 0.7)
    for tk in (2048, 1024, 512, 256, 128):
        if H % tk != 0:
            continue
        footprint = (
            Bp * n_embd * 2                 # x resident (bf16)
            + 2 * n_embd * tk * 2           # w1 tile, double-buffered, bf16
            + 2 * tk * 4                    # b1 tile
            + 2 * tk * tile_n * 2           # w2 tile, double-buffered, bf16
            + 2 * tile_n * 4                # b2 tile
            + 2 * Bp * tile_n * 4           # out tile, double-buffered, f32
            + Bp * tile_n * 4               # acc scratch
        )
        if footprint <= budget:
            return tk
    return 128


def time_embedding(x, w1, b1, w2, b2, *, tile_n=None, tile_k=None):
    """Fused TimeEmbedding forward:  SiLU(x @ w1 + b1) @ w2 + b2.

    x  : (B, n_embd)              float32 (cast to bf16 for the MXU)
    w1 : (n_embd, 4*n_embd)       bf16 recommended (transposed vs. nn.Linear.weight)
    b1 : (4*n_embd,) / (1, 4n)    float32
    w2 : (4*n_embd, 4*n_embd)     bf16 recommended (transposed)
    b2 : (4*n_embd,) / (1, 4n)    float32
    returns (B, 4*n_embd) float32
    """
    B, n_embd = x.shape
    H = w1.shape[1]
    assert w1.shape == (n_embd, H)
    assert w2.shape == (H, H)

    cfg = _chip_config()

    # Native-bf16 MXU path: weights stay bf16, the tiny LHS is cast instead.
    w1 = w1.astype(jnp.bfloat16)
    w2 = w2.astype(jnp.bfloat16)
    b1 = b1.reshape(1, H).astype(jnp.float32)
    b2 = b2.reshape(1, H).astype(jnp.float32)

    # Pad the batch up to the f32 sublane tile so stores are not sublane-masked.
    Bp = max(_SUBLANE, ((B + _SUBLANE - 1) // _SUBLANE) * _SUBLANE)
    if Bp != B:
        x = jnp.pad(x, ((0, Bp - B), (0, 0)))
    x = x.astype(jnp.bfloat16)

    resident_bytes = (_nbytes(x) + _nbytes(w1) + _nbytes(b1)
                      + _nbytes(w2) + _nbytes(b2) + Bp * H * 4)

    force_tiled = (tile_n is not None) or (tile_k is not None)
    can_tile = (H % _LANE == 0)
    use_tiled = can_tile and (force_tiled
                              or resident_bytes > cfg["resident_threshold"])
    # TODO(synk): pad H when 4*n_embd is not a multiple of 128 so the tiled
    # path also covers such sizes (only the resident path runs for them now).

    if use_tiled:
        if tile_n is None:
            if cfg["num_tc"] >= 2 and (H // 2) % _LANE == 0:
                tile_n = H // 2            # one output-column tile per v7x core
            else:
                tile_n = H                 # single-TC: never re-stream w1
        if tile_k is None:
            tile_k = _auto_tile_k(H, n_embd, Bp, tile_n, cfg["vmem_limit"])
        assert H % tile_n == 0 and tile_n % _LANE == 0
        assert H % tile_k == 0 and tile_k % _LANE == 0
        out = _tiled_call(x, w1, b1, w2, b2, tile_n, tile_k, cfg)
    else:
        out = _resident_call(x, w1, b1, w2, b2, cfg)

    return out[:B] if Bp != B else out


# ---------------------------------------------------------------------------
# Reference (pure JAX; mirrors the kernel's precision: bf16 operands,
# f32 accumulation, f32 bias + SiLU)
# ---------------------------------------------------------------------------
def reference(x, w1, b1, w2, b2):
    x = x.astype(jnp.bfloat16).astype(jnp.float32)
    w1 = w1.astype(jnp.bfloat16).astype(jnp.float32)
    w2 = w2.astype(jnp.bfloat16).astype(jnp.float32)
    b1 = b1.reshape(1, -1).astype(jnp.float32)
    b2 = b2.reshape(1, -1).astype(jnp.float32)
    h = x @ w1 + b1
    h = h * jax.nn.sigmoid(h)
    h = h.astype(jnp.bfloat16).astype(jnp.float32)
    return h @ w2 + b2


if __name__ == "__main__":
    key = jax.random.PRNGKey(0)

    def make_params(k, n_embd, batch):
        H = 4 * n_embd
        kx, k1, kb1, k2, kb2 = jax.random.split(k, 5)
        x = jax.random.normal(kx, (batch, n_embd), dtype=jnp.float32)
        # Weights pre-transposed (in, out) and stored bf16 to halve weight DMA.
        w1 = (jax.random.normal(k1, (n_embd, H), dtype=jnp.float32) * 0.05
              ).astype(jnp.bfloat16)
        b1 = jax.random.normal(kb1, (H,), dtype=jnp.float32) * 0.05
        w2 = (jax.random.normal(k2, (H, H), dtype=jnp.float32) * 0.05
              ).astype(jnp.bfloat16)
        b2 = jax.random.normal(kb2, (H,), dtype=jnp.float32) * 0.05
        return x, w1, b1, w2, b2

    ka, kb = jax.random.split(key)

    # Case 1: tiny module sizes -> single-shot, fully VMEM-resident path.
    x, w1, b1, w2, b2 = make_params(ka, n_embd=32, batch=2)
    out = jax.block_until_ready(time_embedding(x, w1, b1, w2, b2))
    ref = reference(x, w1, b1, w2, b2)
    assert out.shape == (2, 128)
    assert jnp.allclose(out, ref, atol=1e-3, rtol=1e-3), "resident path mismatch"

    # Case 2: force the tiled path (grid = 2 output tiles x 4 k-tiles).
    x, w1, b1, w2, b2 = make_params(kb, n_embd=128, batch=8)
    out = jax.block_until_ready(
        time_embedding(x, w1, b1, w2, b2, tile_n=256, tile_k=128))
    ref = reference(x, w1, b1, w2, b2)
    assert out.shape == (8, 512)
    assert jnp.allclose(out, ref, atol=1e-3, rtol=1e-3), "tiled path mismatch"

    # Case 3: tiled path with auto-selected, generation-aware tile sizes.
    out = jax.block_until_ready(
        time_embedding(x, w1, b1, w2, b2, tile_k=128))
    assert jnp.allclose(out, ref, atol=1e-3, rtol=1e-3), "auto-tile mismatch"

    print("KERNEL_OK")
</pallas_src>

<mosaic_0001>
module attributes {stable_mosaic.version = 11 : i64} {
  func.func @_fused_kernel(%arg0: memref<8x32xbf16, #tpu.memory_space<vmem>>, %arg1: memref<32x128xbf16, #tpu.memory_space<vmem>>, %arg2: memref<1x128xf32, #tpu.memory_space<vmem>>, %arg3: memref<128x128xbf16, #tpu.memory_space<vmem>>, %arg4: memref<1x128xf32, #tpu.memory_space<vmem>>, %arg5: memref<8x128xf32, #tpu.memory_space<vmem>>) attributes {dimension_semantics = [], scalar_prefetch = 0 : i64, scratch_operands = 0 : i64, tpu.core_type = #tpu.core_type<tc>} {
    %c0 = arith.constant 0 : index
    %c0_0 = arith.constant 0 : index
    %0 = vector.load %arg0[%c0, %c0_0] : memref<8x32xbf16, #tpu.memory_space<vmem>>, vector<8x32xbf16>
    %c0_1 = arith.constant 0 : index
    %c0_2 = arith.constant 0 : index
    %1 = vector.load %arg1[%c0_1, %c0_2] : memref<32x128xbf16, #tpu.memory_space<vmem>>, vector<32x128xbf16>
    %cst = arith.constant dense<0.000000e+00> : vector<8x128xf32>
    %2 = tpu.matmul %0, %1, %cst {dimension_numbers = #tpu.dot_dimension_numbers<[1], [0], [0], [1], [0, 0, 1, 1], [], []>} : vector<8x32xbf16>, vector<32x128xbf16>, vector<8x128xf32> -> vector<8x128xf32>
    %c0_3 = arith.constant 0 : index
    %c0_4 = arith.constant 0 : index
    %3 = vector.load %arg2[%c0_3, %c0_4] : memref<1x128xf32, #tpu.memory_space<vmem>>, vector<1x128xf32>
    %4 = vector.broadcast %3 : vector<1x128xf32> to vector<8x128xf32>
    %5 = arith.addf %2, %4 : vector<8x128xf32>
    %6 = arith.negf %5 : vector<8x128xf32>
    %7 = math.exp %6 : vector<8x128xf32>
    %cst_5 = arith.constant 1.000000e+00 : f32
    %8 = vector.broadcast %cst_5 : f32 to vector<8x128xf32>
    %9 = arith.addf %8, %7 : vector<8x128xf32>
    %10 = arith.divf %8, %9 : vector<8x128xf32>
    %11 = arith.mulf %5, %10 : vector<8x128xf32>
    %12 = arith.truncf %11 : vector<8x128xf32> to vector<8x128xbf16>
    %c0_6 = arith.constant 0 : index
    %c0_7 = arith.constant 0 : index
    %13 = vector.load %arg3[%c0_6, %c0_7] : memref<128x128xbf16, #tpu.memory_space<vmem>>, vector<128x128xbf16>
    %cst_8 = arith.constant dense<0.000000e+00> : vector<8x128xf32>
    %14 = tpu.matmul %12, %13, %cst_8 {dimension_numbers = #tpu.dot_dimension_numbers<[1], [0], [0], [1], [0, 0, 1, 1], [], []>} : vector<8x128xbf16>, vector<128x128xbf16>, vector<8x128xf32> -> vector<8x128xf32>
    %c0_9 = arith.constant 0 : index
    %c0_10 = arith.constant 0 : index
    %15 = vector.load %arg4[%c0_9, %c0_10] : memref<1x128xf32, #tpu.memory_space<vmem>>, vector<1x128xf32>
    %16 = vector.broadcast %15 : vector<1x128xf32> to vector<8x128xf32>
    %17 = arith.addf %14, %16 : vector<8x128xf32>
    %c0_11 = arith.constant 0 : index
    %c0_12 = arith.constant 0 : index
    %18 = vector.load %arg5[%c0_11, %c0_12] : memref<8x128xf32, #tpu.memory_space<vmem>>, vector<8x128xf32>
    tpu.vector_store %arg5[%c0_11, %c0_12], %17 {strides = array<i32>} : memref<8x128xf32, #tpu.memory_space<vmem>>, vector<8x128xf32>,
    return
  }
}

</mosaic_0001>

<bundles_post_ra>
// kernel: tpu_custom_call.1
= control target key start
LH: loop header
LB: loop body
LE: loop exit
PB: predicated region body
PF: predicated region fallthrough
CT: control target
= control target key end

     0   :  { %10 = vsyncpa [#allocation3], 0  ;;  %s533_s0 = inlined_call_operand.hbm [shape: bf16[8,32], index: 0, kind: input, shape index: {}]   ;;  %s534_s1 = inlined_call_operand.hbm [shape: bf16[32,128], index: 1, kind: input, shape index: {}]   ;;  %s535_s2 = inlined_call_operand.vmem [shape: f32[1,128], index: 2, kind: input, shape index: {}]   ;;  %s536_s3 = inlined_call_operand.hbm [shape: bf16[128,128], index: 3, kind: input, shape index: {}]   ;;  %s537_s4 = inlined_call_operand.vmem [shape: f32[1,128], index: 4, kind: input, shape index: {}]   ;;  %s538_s5 = inlined_call_operand.hbm [shape: f32[8,128], index: 5, kind: output, shape index: {}]  }
   0x1   :  { %11 = vsyncpa [#allocation6], 0 }
   0x2   :  { %12 = vsyncpa [#allocation4], 0  ;;  %s435_s18 = smov [#allocation5]   ;;  %s341_s22 = scalar_lea.hbm %s534_s1, 256 }
   0x3   :  { %s28_s19 = sshll.u32 %s435_s18, 4  ;;  %p342_p0 = scmp.ne.s32.totalorder %s534_s1, %s341_s22  ;;  %s29_s19 = int_to_ptr.vmem [resolvable:$true] %s28_s19 }
   0x4   :  { %p345_p1 = scmp.lt.u32.totalorder %s341_s22, %s534_s1 }
   0x6   :  { %p347_p2 = pnand %p345_p1, %p342_p0 }
   0x8   :  { %350 = shalt.err (!%p347_p2)
}
   0x9   :  { %s351_s27 = scalar_lea.vmem %s29_s19, 256  ;;  %p356_p4 = scmp.lt.s32.totalorder %s29_s19, %s29_s19 }
   0xa   :  { %p352_p3 = scmp.ne.s32.totalorder %s29_s19, %s351_s27  ;;  %p357_p5 = scmp.lt.s32.totalorder %s351_s27, %s351_s27 }
   0xc   :  { %p358_p6 = por %p357_p5, %p356_p4 }
   0xe   :  { %p359_p7 = pnand %p358_p6, %p352_p3 }
  0x10   :  { %362 = shalt.err (!%p359_p7)
}
  0x11   :  { %s436_s28 = smov 64   ;;  %s437_s29 = smov 4  }
  0x12   :  { %34 = dma.hbm_to_vmem [thread:$0]  %s534_s1, 256, %s29_s19, [#allocation6], %s436_s28, %s436_s28, %s437_s29  }
  0x13   :  { %s438_s7 = smov [#allocation2]   ;;  %s439_s9 = smov [#allocation7]  }
  0x14   :  { %s19_s8 = sshll.u32 %s438_s7, 4  ;;  %s42_s10 = sshll.u32 %s439_s9, 4  ;;  %s20_s8 = int_to_ptr.vmem [resolvable:$true] %s19_s8  ;;  %s43_s10 = int_to_ptr.vmem [resolvable:$true] %s42_s10 }
  0x15   :  { %s363_s13 = scalar_lea.hbm %s533_s0, 64 }
  0x16   :  { %p364_p8 = scmp.ne.s32.totalorder %s533_s0, %s363_s13  ;;  %p367_p9 = scmp.lt.u32.totalorder %s363_s13, %s533_s0 }
  0x18   :  { %p369_p10 = pnand %p367_p9, %p364_p8 }
  0x1a   :  { %372 = shalt.err (!%p369_p10)
}
  0x1b   :  { %s373_s1 = scalar_lea.vmem %s20_s8, 64  ;;  %p378_p12 = scmp.lt.s32.totalorder %s20_s8, %s20_s8 }
  0x1c   :  { %p374_p11 = scmp.ne.s32.totalorder %s20_s8, %s373_s1  ;;  %p379_p13 = scmp.lt.s32.totalorder %s373_s1, %s373_s1 }
  0x1e   :  { %p380_p0 = por %p379_p13, %p378_p12 }
  0x20   :  { %p381_p1 = pnand %p380_p0, %p374_p11 }
  0x22   :  { %384 = shalt.err (!%p381_p1)
}
  0x23   :  { %22 = dma.hbm_to_vmem [thread:$0]  %s533_s0, 64, %s20_s8, [#allocation3]  }
  0x24   :  { %s385_s22 = scalar_lea.hbm %s536_s3, 1024 }
  0x25   :  { %p386_p2 = scmp.ne.s32.totalorder %s536_s3, %s385_s22  ;;  %p389_p3 = scmp.lt.u32.totalorder %s385_s22, %s536_s3 }
  0x27   :  { %p391_p4 = pnand %p389_p3, %p386_p2 }
  0x29   :  { %394 = shalt.err (!%p391_p4)
}
  0x2a   :  { %s395_s27 = scalar_lea.vmem %s43_s10, 1024  ;;  %p400_p6 = scmp.lt.s32.totalorder %s43_s10, %s43_s10 }
  0x2b   :  { %p396_p5 = scmp.ne.s32.totalorder %s43_s10, %s395_s27  ;;  %p401_p7 = scmp.lt.s32.totalorder %s395_s27, %s395_s27 }
  0x2d   :  { %p402_p8 = por %p401_p7, %p400_p6 }
  0x2f   :  { %p403_p9 = pnand %p402_p8, %p396_p5 }
  0x31   :  { %406 = shalt.err (!%p403_p9)
}
  0x32   :  { %48 = dma.hbm_to_vmem [thread:$0]  %s536_s3, 1024, %s43_s10, [#allocation6], %s436_s28, %s436_s28, %s437_s29  }
  0x33   :  { %429 = dma.done.wait [#allocation3], 64  }
  0x34   :  { %430 = vsyncadd [#allocation3], 4294967232 }
  0x35   :  { %431 = dma.done.wait [#allocation6], 1280  }
  0x36   :  { %432 = vsyncadd [#allocation6], 4294966016  ;;  %v440_v0 = vmov 0.0   ;;  %vm441_vm0 = vmmov 0   ;;  %v327_v1 = vld [vmem:[#allocation5] sm:$0xff]   ;;  %v328_v2 = vld [vmem:[#allocation5 + $0x8] sm:$0xff]  }
  0x37   :  { %291 = vmatprep.subr.bf16.mxu0 %v440_v0  ;;  %295 = vmatprep.mubr.msk.bf16.mxu0 %vm441_vm0, %v440_v0  ;;  %vm85_vm1 = vcmask 261120   ;;  %v61_v3 = vld [vmem:[#allocation2] sm:$0xf]  ;;  %v329_v4 = vld [vmem:[#allocation7] sm:$0xff]   ;;  %v331_v6 = vld [vmem:[#allocation7 + $0x10] sm:$0xff]   ;;  %s442_s7 = smov [#allocation8]  }
  0x38   :  { %299 = vmatprep.subr.bf16.mxu1 %v440_v0  ;;  %315 = vmatprep.mubr.msk.bf16.mxu1 %vm441_vm0, %v440_v0  ;;  %v330_v5 = vld [vmem:[#allocation7 + $0x8] sm:$0xff]   ;;  %v332_v7 = vld [vmem:[#allocation7 + $0x18] sm:$0xff]   ;;  %v333_v8 = vld [vmem:[#allocation7 + $0x20] sm:$0xff]  }
  0x39   :  { %292 = vmatpush3.bf16.msra.mxu0 %v327_v1  ;;  %300 = vmatpush3.bf16.msra.mxu1 %v329_v4  ;;  %v334_v9 = vld [vmem:[#allocation7 + $0x28] sm:$0xff]   ;;  %v335_v10 = vld [vmem:[#allocation7 + $0x30] sm:$0xff]   ;;  %v336_v11 = vld [vmem:[#allocation7 + $0x38] sm:$0xff]  }
  0x3a   :  { %293 = vmatprep.subr.bf16.mxu0 %v440_v0  ;;  %301 = vmatprep.subr.bf16.mxu1 %v440_v0  ;;  %v265_v12 = vld [vmem:[%s535_s2] ss:$0 sm:$0xff]  ;;  %s255_s2 = sshll.u32 %s442_s7, 4  ;;  %s256_s2 = int_to_ptr.vmem [resolvable:$true] %s255_s2 }
  0x3b   :  { %v270_v24 = vld [vmem:[%s537_s4] ss:$0 sm:$0xff]  ;;  %s407_s8 = scalar_lea.vmem %s256_s2, 128  ;;  %p412_p11 = scmp.lt.s32.totalorder %s256_s2, %s256_s2 }
  0x3c   :  { %p408_p10 = scmp.ne.s32.totalorder %s256_s2, %s407_s8  ;;  %p413_p12 = scmp.lt.s32.totalorder %s407_s8, %s407_s8 }
  0x3d   :  { %294 = vmatpush3.bf16.msra.mxu0 %v328_v2  ;;  %302 = vmatpush3.bf16.msra.mxu1 %v330_v5 }
  0x3e   :  { %303 = vmatprep.subr.bf16.mxu1 %v440_v0  ;;  %p414_p13 = por %p413_p12, %p412_p11 }
  0x40   :  { %296 = vmatmul.mubr.msk.bf16.vlgmr.msra.gmra.mrb[0].mxu0 %vm85_vm1, %v61_v3  ;;  %p415_p0 = pnand %p414_p13, %p408_p10 }
  0x41   :  { %304 = vmatpush3.bf16.msra.mxu1 %v331_v6 }
  0x42   :  { %305 = vmatprep.subr.bf16.mxu1 %v440_v0 }
  0x45   :  { %306 = vmatpush3.bf16.msra.mxu1 %v332_v7 }
  0x46   :  { %307 = vmatprep.subr.bf16.mxu1 %v440_v0 }
  0x49   :  { %308 = vmatpush3.bf16.msra.mxu1 %v333_v8 }
  0x4a   :  { %309 = vmatprep.subr.bf16.mxu1 %v440_v0 }
  0x4d   :  { %310 = vmatpush3.bf16.msra.mxu1 %v334_v9 }
  0x4e   :  { %311 = vmatprep.subr.bf16.mxu1 %v440_v0 }
  0x51   :  { %312 = vmatpush3.bf16.msra.mxu1 %v335_v10 }
  0x52   :  { %313 = vmatprep.subr.bf16.mxu1 %v440_v0 }
  0x55   :  { %314 = vmatpush3.bf16.msra.mxu1 %v336_v11 }
 0x113   :  { %v123_v13 = vpop.f32.mrb[0].mxu0 }
 0x114   :  { %v124_v14 = vadd.f32 %v265_v12, %v123_v13  ;;  %v297_v15 = vpop.f32.mrb[1].mxu0 }
 0x115   :  { %v126_v16 = vpop.f32.mrb[2].mxu0 }
 0x116   :  { %v269_v17 = vmul.f32 -1.442695, %v124_v14  ;;  %v298_v18 = vpop.f32.mrb[3].mxu0 }
 0x118   :  { %337 = vpow2.f32 %v269_v17 }
 0x122   :  { %v338_v19 = vpop.eup %337 }
 0x123   :  { %v132_v20 = vadd.f32 1.0, %v338_v19 }
 0x125   :  { %339 = vrcp.f32 %v132_v20 }
 0x12f   :  { %v340_v21 = vpop.eup %339 }
 0x130   :  { %v135_v22 = vmul.f32 %v340_v21, %v124_v14 }
 0x132   :  { %v136_v23 = vpack.c.bf16 %v135_v22, %v135_v22 }
 0x134   :  { %316 = vmatmul.mubr.bf16.vlgmr.msra.gmra.mrb[0].mxu1 %v136_v23 }
 0x207   :  { %v242_v25 = vpop.f32.mrb[0].mxu1 }
 0x208   :  { %v243_v26 = vadd.f32 %v270_v24, %v242_v25  ;;  %v317_v27 = vpop.f32.mrb[1].mxu1 }
 0x209   :  { %v245_v28 = vpop.f32.mrb[2].mxu1 }
 0x20a   :  { %248 = vst [vmem:[#allocation8] sm:$0xff] %v243_v26  ;;  %v318_v29 = vpop.f32.mrb[3].mxu1 }
 0x20b   :  { %418 = shalt.err (!%p415_p0)
}
 0x20c   :  { %s419_s4 = scalar_lea.hbm %s538_s5, 128 }
 0x20d   :  { %p420_p1 = scmp.ne.s32.totalorder %s538_s5, %s419_s4  ;;  %p423_p2 = scmp.lt.u32.totalorder %s419_s4, %s538_s5 }
 0x20f   :  { %p425_p3 = pnand %p423_p2, %p420_p1 }
 0x211   :  { %428 = shalt.err (!%p425_p3)
}
 0x212   :  { %258 = dma.vmem_to_hbm [thread:$0]  %s256_s2, 128, %s538_s5, [#allocation4]  }
 0x213   :  { %433 = dma.done.wait [#allocation4], 128  }
 0x214   :  { %434 = vsyncadd [#allocation4], 4294967168 }
 0x215   :  { %262 = vsyncpa [#allocation3], 1 }
 0x216   :  { %263 = vsyncpa [#allocation6], 1 }
 0x217   :  { %264 = vsyncpa [#allocation4], 1 }

</bundles_post_ra>
